<compile_context>
chip_gen: v6e
topology: v6e:2x2x1
jax: 0.10.0
libtpu: 0.0.40
codegen_flags: <defaults>
</compile_context>

<pallas_src>
import numpy as np
import jax
import jax.numpy as jnp
from jax.experimental import pallas as pl
from jax.experimental.pallas import tpu as pltpu

# ---- configuration (CVNeuralNetwork2(num_qumodes=4, num_layers=2, cutoff_dim=2)) ----
NUM_QUMODES = 4
NUM_LAYERS = 2
CUTOFF = 2
BATCH = 8
FOCK_DIM = CUTOFF ** NUM_QUMODES                    # 16
ND = NUM_QUMODES * FOCK_DIM                         # 64 (stacked-observable width)
ND_PAD = ((ND + 127) // 128) * 128                  # 128, lane-dense intermediate width
OUT_PAD = 128                                       # lane-dense output width (>= N)


# --------------------- constant circuit unitary & folded observables (host numpy) ---------------------
def _build_unitary_np(params, n_modes, n_layers, cutoff):
    """Exactly mirrors the torch module's gate sequence on the truncated Fock space."""
    a = np.diag(np.sqrt(np.arange(1, cutoff, dtype=np.float64)), k=1).astype(np.complex128)
    ad = a.conj().T
    eye = np.eye(cutoff, dtype=np.complex128)
    dim = cutoff ** n_modes

    def expm_ah(gen):
        # gen is anti-Hermitian: gen = i*H with H Hermitian -> expm via eigh (exact, stable)
        lam, V = np.linalg.eigh(-1j * gen)
        return (V * np.exp(1j * lam)[None, :]) @ V.conj().T

    def lift_single(g, wire):
        op = np.ones((1, 1), dtype=np.complex128)
        for w in range(n_modes):
            op = np.kron(op, g if w == wire else eye)
        return op

    def lift_pair(g2, wire):
        op = np.ones((1, 1), dtype=np.complex128)
        w = 0
        while w < n_modes:
            if w == wire:
                op = np.kron(op, g2)
                w += 2
            else:
                op = np.kron(op, eye)
                w += 1
        return op

    def displacement(r, phi):
        alpha = r * np.exp(1j * phi)
        return expm_ah(alpha * ad - np.conj(alpha) * a)

    def squeezing(r, phi):
        z = r * np.exp(1j * phi)
        return expm_ah(0.5 * (np.conj(z) * (a @ a) - z * (ad @ ad)))

    def rotation(phi):
        return np.diag(np.exp(1j * phi * np.arange(cutoff))).astype(np.complex128)

    def kerr(kappa):
        n = np.arange(cutoff)
        return np.diag(np.exp(1j * kappa * n * n)).astype(np.complex128)

    def beamsplitter(theta, phi):
        gen = theta * (np.exp(1j * phi) * np.kron(a, ad) - np.exp(-1j * phi) * np.kron(ad, a))
        return expm_ah(gen)

    def interferometer(p, U):
        half = n_modes * (n_modes - 1) // 2
        theta = p[:half]
        phi = p[half:2 * half]
        rphi = p[2 * half:]          # == p[-n_modes + 1:] in the torch code
        if n_modes == 1:
            return lift_single(rotation(rphi[0]), 0) @ U
        idx = 0
        for l in range(n_modes):
            for k in range(n_modes - 1):
                if (l + k) % 2 != 1:
                    U = lift_pair(beamsplitter(theta[idx], phi[idx]), k) @ U
                    idx += 1
        for i in range(max(1, n_modes - 1)):
            U = lift_single(rotation(rphi[i]), i) @ U
        return U

    U = np.eye(dim, dtype=np.complex128)
    for layer in range(n_layers):
        U = interferometer(params["theta_1"][layer], U)
        for w in range(n_modes):
            U = lift_single(squeezing(params["squeezing_r"][layer, w],
                                      params["squeezing_phi"][layer, w]), w) @ U
        U = interferometer(params["theta_2"][layer], U)
        for w in range(n_modes):
            U = lift_single(displacement(params["displacement_r"][layer, w],
                                         params["displacement_phi"][layer, w]), w) @ U
            U = lift_single(kerr(params["kerr_params"][layer, w]), w) @ U
    return U


def _build_folded_operands_np(U, n_modes, cutoff):
    """Fold the constant circuit unitary into the quadrature observables.

    Returns:
      m_t_pad : (D, ND_PAD)      f32, m_t_pad[d, j*D+e] = Re(U^H X_j U)[d, e], zero-padded lanes
      s_pad   : (ND_PAD, OUT_PAD) f32 block-sum selector (column j sums Fock-block j)
      xops    : (N, D, D) float64 raw quadrature operators (for the host reference check)
    """
    dim = cutoff ** n_modes
    a = np.diag(np.sqrt(np.arange(1, cutoff, dtype=np.float64)), k=1).astype(np.complex128)
    x = a + a.conj().T                              # x_{phi=0} = a + a^dagger (hbar = 2)
    eye = np.eye(cutoff, dtype=np.complex128)
    xops = []
    for wire in range(n_modes):
        op = np.ones((1, 1), dtype=np.complex128)
        for w in range(n_modes):
            op = np.kron(op, x if w == wire else eye)
        xops.append(op)
    xops = np.stack(xops, axis=0)                                       # (N, D, D)

    M = np.real(np.einsum("da,nde,eb->nab", U.conj(), xops, U))         # (N, D, D) float64
    m_t = np.transpose(M, (1, 0, 2)).reshape(dim, n_modes * dim)        # (D, N*D)

    m_t_pad = np.zeros((dim, ND_PAD), dtype=np.float32)
    m_t_pad[:, :n_modes * dim] = m_t.astype(np.float32)

    s_pad = np.zeros((ND_PAD, OUT_PAD), dtype=np.float32)
    s_pad[:n_modes * dim, :n_modes] = np.kron(np.eye(n_modes, dtype=np.float32),
                                              np.ones((dim, 1), dtype=np.float32))
    return jnp.asarray(m_t_pad), jnp.asarray(s_pad), np.real(xops)


# ----------------------- per-sample initial states (input-dependent JAX glue) -----------------------
def initial_states(x, n_modes, cutoff):
    # Displacement(x_i, 0) |0> -> truncated coherent state (real amplitudes since phi = 0).
    b = x.shape[0]
    alpha = x[..., None]                                                 # (B, N, 1)
    if cutoff > 1:
        pows = jnp.concatenate(
            [jnp.ones_like(alpha),
             jnp.cumprod(jnp.repeat(alpha, cutoff - 1, axis=-1), axis=-1)], axis=-1)
    else:
        pows = jnp.ones_like(alpha)
    fact = jnp.cumprod(jnp.concatenate(
        [jnp.ones((1,), jnp.float32), jnp.arange(1.0, cutoff, dtype=jnp.float32)]))
    coeff = jnp.exp(-0.5 * alpha ** 2) * pows / jnp.sqrt(fact)           # (B, N, cutoff)
    psi = coeff[:, 0, :]
    for w in range(1, n_modes):
        psi = (psi[:, :, None] * coeff[:, w, :][:, None, :]).reshape(b, -1)
    return psi.astype(jnp.float32)                                       # (B, cutoff**N)


# ----------------------------------------- Pallas kernel -----------------------------------------
def _cvqnn_kernel(psi_ref, psi_rep_ref, m_ref, s_ref, out_ref):
    # psi_ref     : (TB, D)        real initial product-coherent states
    # psi_rep_ref : (TB, ND_PAD)   psi tiled once per observable, lane-padded (built in wrapper)
    # m_ref       : (D, ND_PAD)    folded Re(U^H X_j U), pre-transposed/stacked (no in-kernel .T)
    # s_ref       : (ND_PAD, OUT_PAD) block-sum selector, lane-padded
    # out_ref     : (TB, OUT_PAD)  lane-dense output; column j < N holds <x_j>
    psi = psi_ref[...]
    z = jnp.dot(psi, m_ref[...], preferred_element_type=jnp.float32)       # (TB, ND_PAD) MXU
    pz = psi_rep_ref[...] * z                                               # (TB, ND_PAD) VPU
    out_ref[...] = jnp.dot(pz, s_ref[...], preferred_element_type=jnp.float32)  # (TB, OUT_PAD) MXU


@jax.jit
def _forward_padded(psi0, psi_rep_pad, m_t_pad, s_pad):
    b, d = psi0.shape
    nd_pad = psi_rep_pad.shape[1]
    out_w = s_pad.shape[1]
    # Batch tiling: single tile for the small demo batch; 128-row tiles (parallel across
    # TensorCores on v7x) when the batch is large and evenly divisible.
    tb = 128 if (b % 128 == 0 and b >= 128) else b
    grid = (b // tb,)
    return pl.pallas_call(
        _cvqnn_kernel,
        out_shape=jax.ShapeDtypeStruct((b, out_w), jnp.float32),
        grid=grid,
        in_specs=[
            pl.BlockSpec((tb, d), lambda i: (i, 0)),
            pl.BlockSpec((tb, nd_pad), lambda i: (i, 0)),
            pl.BlockSpec((d, nd_pad), lambda i: (0, 0)),
            pl.BlockSpec((nd_pad, out_w), lambda i: (0, 0)),
        ],
        out_specs=pl.BlockSpec((tb, out_w), lambda i: (i, 0)),
        compiler_params=pltpu.CompilerParams(dimension_semantics=("parallel",)),
    )(psi0, psi_rep_pad, m_t_pad, s_pad)


def cvqnn_forward(psi0, psi_rep_pad, m_t_pad, s_pad, n_modes):
    b = psi0.shape[0]
    b_pad = max(8, ((b + 7) // 8) * 8)          # sublane-align the batch (no-op for demo)
    if b_pad != b:
        psi0 = jnp.pad(psi0, ((0, b_pad - b), (0, 0)))
        psi_rep_pad = jnp.pad(psi_rep_pad, ((0, b_pad - b), (0, 0)))
    y_pad = _forward_padded(psi0, psi_rep_pad, m_t_pad, s_pad)
    return y_pad[:b, :n_modes]


# ----------------------------------------------- main -----------------------------------------------
if __name__ == "__main__":
    key = jax.random.PRNGKey(0)
    keys = jax.random.split(key, 8)
    active_sd = 0.1
    passive_sd = 2.0 * np.pi
    n_if = NUM_QUMODES * (NUM_QUMODES - 1) + max(1, NUM_QUMODES - 1)

    params = {
        "theta_1": np.asarray(jax.random.normal(keys[0], (NUM_LAYERS, n_if), jnp.float32)) * passive_sd,
        "theta_2": np.asarray(jax.random.normal(keys[1], (NUM_LAYERS, n_if), jnp.float32)) * passive_sd,
        "squeezing_r": np.asarray(jax.random.normal(keys[2], (NUM_LAYERS, NUM_QUMODES), jnp.float32)) * active_sd,
        "squeezing_phi": np.asarray(jax.random.normal(keys[3], (NUM_LAYERS, NUM_QUMODES), jnp.float32)) * passive_sd,
        "displacement_r": np.asarray(jax.random.normal(keys[4], (NUM_LAYERS, NUM_QUMODES), jnp.float32)) * active_sd,
        "displacement_phi": np.asarray(jax.random.normal(keys[5], (NUM_LAYERS, NUM_QUMODES), jnp.float32)) * passive_sd,
        "kerr_params": np.asarray(jax.random.normal(keys[6], (NUM_LAYERS, NUM_QUMODES), jnp.float32)) * active_sd,
    }
    x = jax.random.normal(keys[7], (BATCH, NUM_QUMODES), jnp.float32) * 0.5

    # Host glue: input-independent circuit unitary folded into the quadrature observables
    # (numpy complex128, no device work), plus the input-dependent initial states and a
    # pre-tiled copy so the kernel has zero relayout / transpose work.
    U = _build_unitary_np(params, NUM_QUMODES, NUM_LAYERS, CUTOFF)            # (D, D) complex128
    m_t_pad, s_pad, xops_np = _build_folded_operands_np(U, NUM_QUMODES, CUTOFF)
    psi0 = initial_states(x, NUM_QUMODES, CUTOFF)                             # (B, D) float32
    psi_rep = jnp.tile(psi0, (1, NUM_QUMODES))                                # (B, N*D)
    psi_rep_pad = jnp.pad(psi_rep, ((0, 0), (0, ND_PAD - ND)))                # (B, ND_PAD)

    y = jax.block_until_ready(
        cvqnn_forward(psi0, psi_rep_pad, m_t_pad, s_pad, NUM_QUMODES))        # (B, N)

    # numpy (float64) reference of the same math for a sanity check
    psi_np = np.asarray(psi0).astype(np.complex128)
    phi_np = psi_np @ U.T                                                     # |psi'> = U|psi>
    ref = np.real(np.einsum("bd,nde,be->bn", phi_np.conj(),
                            xops_np.astype(np.float64), phi_np))

    assert y.shape == (BATCH, NUM_QUMODES)
    assert np.allclose(np.asarray(y), ref, atol=5e-2, rtol=5e-2)
    print("KERNEL_OK")
</pallas_src>

<mosaic_0001>
module attributes {stable_mosaic.version = 11 : i64} {
  func.func @_cvqnn_kernel(%arg0: i32, %arg1: memref<8x16xf32, #tpu.memory_space<vmem>>, %arg2: memref<8x128xf32, #tpu.memory_space<vmem>>, %arg3: memref<16x128xf32, #tpu.memory_space<vmem>>, %arg4: memref<128x128xf32, #tpu.memory_space<vmem>>, %arg5: memref<8x128xf32, #tpu.memory_space<vmem>>) attributes {dimension_semantics = [#tpu.dimension_semantics<parallel>], iteration_bounds = array<i64: 1>, scalar_prefetch = 0 : i64, scratch_operands = 0 : i64, tpu.core_type = #tpu.core_type<tc>, window_params = [{transform_indices = @transform_0, window_bounds = array<i64: 8, 16>}, {transform_indices = @transform_1, window_bounds = array<i64: 8, 128>}, {pipeline_mode = #tpu.pipeline_mode<synchronous>, transform_indices = @transform_2, window_bounds = array<i64: 16, 128>}, {pipeline_mode = #tpu.pipeline_mode<synchronous>, transform_indices = @transform_3, window_bounds = array<i64: 128, 128>}, {transform_indices = @transform_4, window_bounds = array<i64: 8, 128>}]} {
    %c0 = arith.constant 0 : index
    %c0_0 = arith.constant 0 : index
    %0 = vector.load %arg1[%c0, %c0_0] : memref<8x16xf32, #tpu.memory_space<vmem>>, vector<8x16xf32>
    %c0_1 = arith.constant 0 : index
    %c0_2 = arith.constant 0 : index
    %1 = vector.load %arg3[%c0_1, %c0_2] : memref<16x128xf32, #tpu.memory_space<vmem>>, vector<16x128xf32>
    %cst = arith.constant dense<0.000000e+00> : vector<8x128xf32>
    %2 = tpu.matmul %0, %1, %cst {dimension_numbers = #tpu.dot_dimension_numbers<[1], [0], [0], [1], [0, 0, 1, 1], [], []>} : vector<8x16xf32>, vector<16x128xf32>, vector<8x128xf32> -> vector<8x128xf32>
    %c0_3 = arith.constant 0 : index
    %c0_4 = arith.constant 0 : index
    %3 = vector.load %arg2[%c0_3, %c0_4] : memref<8x128xf32, #tpu.memory_space<vmem>>, vector<8x128xf32>
    %4 = arith.mulf %3, %2 : vector<8x128xf32>
    %c0_5 = arith.constant 0 : index
    %c0_6 = arith.constant 0 : index
    %5 = vector.load %arg4[%c0_5, %c0_6] : memref<128x128xf32, #tpu.memory_space<vmem>>, vector<128x128xf32>
    %cst_7 = arith.constant dense<0.000000e+00> : vector<8x128xf32>
    %6 = tpu.matmul %4, %5, %cst_7 {dimension_numbers = #tpu.dot_dimension_numbers<[1], [0], [0], [1], [0, 0, 1, 1], [], []>} : vector<8x128xf32>, vector<128x128xf32>, vector<8x128xf32> -> vector<8x128xf32>
    %c0_8 = arith.constant 0 : index
    %c0_9 = arith.constant 0 : index
    %7 = vector.load %arg5[%c0_8, %c0_9] : memref<8x128xf32, #tpu.memory_space<vmem>>, vector<8x128xf32>
    tpu.vector_store %arg5[%c0_8, %c0_9], %6 {strides = array<i32>} : memref<8x128xf32, #tpu.memory_space<vmem>>, vector<8x128xf32>,
    return
  }
  func.func @transform_0(%arg0: i32) -> (i32, i32) {
    %c0_i32 = arith.constant 0 : i32
    %c0_i32_0 = arith.constant 0 : i32
    return %arg0, %c0_i32 : i32, i32
  }
  func.func @transform_1(%arg0: i32) -> (i32, i32) {
    %c0_i32 = arith.constant 0 : i32
    %c0_i32_0 = arith.constant 0 : i32
    return %arg0, %c0_i32 : i32, i32
  }
  func.func @transform_2(%arg0: i32) -> (i32, i32) {
    %c0_i32 = arith.constant 0 : i32
    %c0_i32_0 = arith.constant 0 : i32
    %c0_i32_1 = arith.constant 0 : i32
    return %c0_i32, %c0_i32_0 : i32, i32
  }
  func.func @transform_3(%arg0: i32) -> (i32, i32) {
    %c0_i32 = arith.constant 0 : i32
    %c0_i32_0 = arith.constant 0 : i32
    %c0_i32_1 = arith.constant 0 : i32
    return %c0_i32, %c0_i32_0 : i32, i32
  }
  func.func @transform_4(%arg0: i32) -> (i32, i32) {
    %c0_i32 = arith.constant 0 : i32
    %c0_i32_0 = arith.constant 0 : i32
    return %arg0, %c0_i32 : i32, i32
  }
}

</mosaic_0001>

<bundles_post_ra>
// kernel: _forward_padded.1
= control target key start
LH: loop header
LB: loop body
LE: loop exit
PB: predicated region body
PF: predicated region fallthrough
CT: control target
= control target key end

     0   :  { %9 = vsyncpa [#allocation3], 0  ;;  %s481_s0 = inlined_call_operand.hbm [shape: f32[8,16], index: 0, kind: input, shape index: {}]   ;;  %s482_s1 = inlined_call_operand.hbm [shape: f32[8,128], index: 1, kind: input, shape index: {}]   ;;  %s483_s2 = inlined_call_operand.hbm [shape: f32[16,128], index: 2, kind: input, shape index: {}]   ;;  %s484_s3 = inlined_call_operand.hbm [shape: f32[128,128], index: 3, kind: input, shape index: {}]   ;;  %s485_s4 = inlined_call_operand.hbm [shape: f32[8,128], index: 4, kind: output, shape index: {}]  }
   0x1   :  { %10 = vsyncpa [#allocation6], 0 }
   0x2   :  { %11 = vsyncpa [#allocation9], 0 }
   0x3   :  { %12 = vsyncpa [#allocation4], 0  ;;  %s432_s15 = smov [#allocation5]   ;;  %s433_s17 = smov [#allocation2]  }
   0x4   :  { %s29_s16 = sshll.u32 %s432_s15, 4  ;;  %s19_s18 = sshll.u32 %s433_s17, 4  ;;  %s30_s16 = int_to_ptr.vmem [resolvable:$true] %s29_s16  ;;  %s20_s18 = int_to_ptr.vmem [resolvable:$true] %s19_s18 }
   0x5   :  { %s332_s19 = scalar_lea.vmem %s30_s16, 128  ;;  %p337_p1 = scmp.lt.s32.totalorder %s30_s16, %s30_s16 }
   0x6   :  { %p333_p0 = scmp.ne.s32.totalorder %s30_s16, %s332_s19  ;;  %p338_p2 = scmp.lt.s32.totalorder %s332_s19, %s332_s19 }
   0x8   :  { %p339_p3 = por %p338_p2, %p337_p1 }
   0xa   :  { %p340_p4 = pnand %p339_p3, %p333_p0 }
   0xc   :  { %343 = shalt.err (!%p340_p4)
}
   0xd   :  { %32 = dma.hbm_to_vmem [thread:$0]  %s482_s1, 128, %s30_s16, [#allocation6]  }
   0xe   :  { %s352_s22 = scalar_lea.vmem %s20_s18, 128  ;;  %p357_p6 = scmp.lt.s32.totalorder %s20_s18, %s20_s18 }
   0xf   :  { %p353_p5 = scmp.ne.s32.totalorder %s20_s18, %s352_s22  ;;  %p358_p7 = scmp.lt.s32.totalorder %s352_s22, %s352_s22 }
  0x11   :  { %p359_p8 = por %p358_p7, %p357_p6 }
  0x13   :  { %p360_p9 = pnand %p359_p8, %p353_p5 }
  0x15   :  { %363 = shalt.err (!%p360_p9)
}
  0x16   :  { %22 = dma.hbm_to_vmem [thread:$0]  %s481_s0, 128, %s20_s18, [#allocation3]  }
  0x17   :  { %s434_s25 = smov [#allocation7]  }
  0x18   :  { %s38_s26 = sshll.u32 %s434_s25, 4  ;;  %s39_s26 = int_to_ptr.vmem [resolvable:$true] %s38_s26 }
  0x19   :  { %s372_s27 = scalar_lea.vmem %s39_s26, 256  ;;  %p377_p11 = scmp.lt.s32.totalorder %s39_s26, %s39_s26 }
  0x1a   :  { %p373_p10 = scmp.ne.s32.totalorder %s39_s26, %s372_s27  ;;  %p378_p12 = scmp.lt.s32.totalorder %s372_s27, %s372_s27 }
  0x1c   :  { %p379_p13 = por %p378_p12, %p377_p11 }
  0x1e   :  { %p380_p0 = pnand %p379_p13, %p373_p10 }
  0x20   :  { %383 = shalt.err (!%p380_p0)
}
  0x21   :  { %s435_s1 = smov 128   ;;  %s436_s28 = smov 8  }
  0x22   :  { %44 = dma.hbm_to_vmem [thread:$0]  %s483_s2, 256, %s39_s26, [#allocation6], %s435_s1, %s435_s1, %s436_s28  }
  0x23   :  { %s437_s5 = smov [#allocation8]  }
  0x24   :  { %s50_s6 = sshll.u32 %s437_s5, 4  ;;  %s51_s6 = int_to_ptr.vmem [resolvable:$true] %s50_s6 }
  0x25   :  { %s392_s0 = scalar_lea.vmem %s51_s6, 2048  ;;  %p397_p2 = scmp.lt.s32.totalorder %s51_s6, %s51_s6 }
  0x26   :  { %p393_p1 = scmp.ne.s32.totalorder %s51_s6, %s392_s0  ;;  %p398_p3 = scmp.lt.s32.totalorder %s392_s0, %s392_s0 }
  0x28   :  { %p399_p4 = por %p398_p3, %p397_p2 }
  0x2a   :  { %p400_p5 = pnand %p399_p4, %p393_p1 }
  0x2c   :  { %403 = shalt.err (!%p400_p5)
}
  0x2d   :  { %56 = dma.hbm_to_vmem [thread:$0]  %s484_s3, 2048, %s51_s6, [#allocation9], %s435_s1, %s435_s1, %s436_s28  }
  0x2e   :  { %424 = dma.done.wait [#allocation3], 128  }
  0x2f   :  { %425 = vsyncadd [#allocation3], 4294967168 }
  0x30   :  { %426 = dma.done.wait [#allocation6], 384  }
  0x31   :  { %427 = vsyncadd [#allocation6], 4294966912 }
  0x32   :  { %428 = dma.done.wait [#allocation9], 2048  }
  0x33   :  { %429 = vsyncadd [#allocation9], 4294965248  ;;  %v438_v0 = vmov 0.0   ;;  %vm439_vm0 = vmmov 0   ;;  %v71_v1 = vld [vmem:[#allocation7 + $0x8] sm:$0xff]  ;;  %v70_v2 = vld [vmem:[#allocation7] sm:$0xff] }
  0x34   :  { %273 = vmatprep.subr.mxu0 %v438_v0  ;;  %277 = vmatprep.mubr.msk.f32.mxu0 %vm439_vm0, %v438_v0  ;;  %v69_v3 = vld [vmem:[#allocation2] sm:$0xff]  ;;  %vm72_vm1 = vcmask 130048   ;;  %v163_v4 = vld [vmem:[#allocation8 + $0x78] sm:$0xff]  ;;  %v162_v5 = vld [vmem:[#allocation8 + $0x70] sm:$0xff]  ;;  %s440_s2 = smov [#allocation10]  }
  0x35   :  { %280 = vmatprep.subr.mxu1 %v438_v0  ;;  %312 = vmatprep.mubr.msk.f32.mxu1 %vm439_vm0, %v438_v0  ;;  %v161_v6 = vld [vmem:[#allocation8 + $0x68] sm:$0xff]  ;;  %v160_v7 = vld [vmem:[#allocation8 + $0x60] sm:$0xff]  ;;  %v159_v8 = vld [vmem:[#allocation8 + $0x58] sm:$0xff]  ;;  %s241_s3 = sshll.u32 %s440_s2, 4  ;;  %s242_s3 = int_to_ptr.vmem [resolvable:$true] %s241_s3 }
  0x36   :  { %274 = vmatpush3.msra.mxu0 %v71_v1  ;;  %281 = vmatpush3.msra.mxu1 %v163_v4  ;;  %v158_v9 = vld [vmem:[#allocation8 + $0x50] sm:$0xff]  ;;  %v157_v10 = vld [vmem:[#allocation8 + $0x48] sm:$0xff]  ;;  %v156_v11 = vld [vmem:[#allocation8 + $0x40] sm:$0xff]  ;;  %s404_s9 = scalar_lea.vmem %s242_s3, 128  ;;  %p409_p7 = scmp.lt.s32.totalorder %s242_s3, %s242_s3 }
  0x37   :  { %275 = vmatprep.subr.mxu0 %v438_v0  ;;  %282 = vmatprep.subr.mxu1 %v438_v0  ;;  %v155_v12 = vld [vmem:[#allocation8 + $0x38] sm:$0xff]  ;;  %v154_v13 = vld [vmem:[#allocation8 + $0x30] sm:$0xff]  ;;  %v153_v14 = vld [vmem:[#allocation8 + $0x28] sm:$0xff]  ;;  %p405_p6 = scmp.ne.s32.totalorder %s242_s3, %s404_s9  ;;  %p410_p8 = scmp.lt.s32.totalorder %s404_s9, %s404_s9 }
  0x38   :  { %276 = vmatpush3.msra.mxu0 %v70_v2  ;;  %283 = vmatpush3.msra.mxu1 %v162_v5  ;;  %v152_v15 = vld [vmem:[#allocation8 + $0x20] sm:$0xff]  ;;  %v151_v16 = vld [vmem:[#allocation8 + $0x18] sm:$0xff]  ;;  %v150_v17 = vld [vmem:[#allocation8 + $0x10] sm:$0xff] }
  0x39   :  { %278 = vmatmul.mubr.msk.f32.vlgmr.msra.gmra.mxu0 %vm72_vm1, %v69_v3  ;;  %284 = vmatprep.subr.mxu1 %v438_v0  ;;  %v149_v18 = vld [vmem:[#allocation8 + $0x8] sm:$0xff]  ;;  %v148_v19 = vld [vmem:[#allocation8] sm:$0xff]  ;;  %p411_p9 = por %p410_p8, %p409_p7 }
  0x3a   :  { %285 = vmatpush3.msra.mxu1 %v161_v6  ;;  %v146_v20 = vld [vmem:[#allocation5] sm:$0xff] }
  0x3b   :  { %286 = vmatprep.subr.mxu1 %v438_v0  ;;  %p412_p10 = pnand %p411_p9, %p405_p6 }
  0x3c   :  { %287 = vmatpush3.msra.mxu1 %v160_v7 }
  0x3d   :  { %288 = vmatprep.subr.mxu1 %v438_v0 }
  0x3e   :  { %289 = vmatpush3.msra.mxu1 %v159_v8 }
  0x3f   :  { %290 = vmatprep.subr.mxu1 %v438_v0 }
  0x40   :  { %291 = vmatpush3.msra.mxu1 %v158_v9 }
  0x41   :  { %292 = vmatprep.subr.mxu1 %v438_v0 }
  0x42   :  { %293 = vmatpush3.msra.mxu1 %v157_v10 }
  0x43   :  { %294 = vmatprep.subr.mxu1 %v438_v0 }
  0x44   :  { %295 = vmatpush3.msra.mxu1 %v156_v11 }
  0x45   :  { %296 = vmatprep.subr.mxu1 %v438_v0 }
  0x46   :  { %297 = vmatpush3.msra.mxu1 %v155_v12 }
  0x47   :  { %298 = vmatprep.subr.mxu1 %v438_v0 }
  0x48   :  { %299 = vmatpush3.msra.mxu1 %v154_v13 }
  0x49   :  { %300 = vmatprep.subr.mxu1 %v438_v0 }
  0x4a   :  { %301 = vmatpush3.msra.mxu1 %v153_v14 }
  0x4b   :  { %302 = vmatprep.subr.mxu1 %v438_v0 }
  0x4c   :  { %303 = vmatpush3.msra.mxu1 %v152_v15 }
  0x4d   :  { %304 = vmatprep.subr.mxu1 %v438_v0 }
  0x4e   :  { %305 = vmatpush3.msra.mxu1 %v151_v16 }
  0x4f   :  { %306 = vmatprep.subr.mxu1 %v438_v0 }
  0x50   :  { %307 = vmatpush3.msra.mxu1 %v150_v17 }
  0x51   :  { %308 = vmatprep.subr.mxu1 %v438_v0 }
  0x52   :  { %309 = vmatpush3.msra.mxu1 %v149_v18 }
  0x53   :  { %310 = vmatprep.subr.mxu1 %v438_v0 }
  0x54   :  { %311 = vmatpush3.msra.mxu1 %v148_v19 }
  0xf9   :  { %v142_v21 = vpop.f32.mrf.mxu0 }
  0xfa   :  { %v147_v22 = vmul.f32 %v146_v20, %v142_v21 }
  0xfb   :  { %v279_v23 = vpop.f32.mrf.mxu0 }
  0xfc   :  { %313 = vmatmul.mubr.f32.vlgmr.msra.gmra.mxu1 %v147_v22 }
 0x1bc   :  { %v230_v24 = vpop.f32.mrf.mxu1 }
 0x1bd   :  { %234 = vst [vmem:[#allocation10] sm:$0xff] %v230_v24 }
 0x1be   :  { %v314_v25 = vpop.f32.mrf.mxu1 }
 0x1bf   :  { %415 = shalt.err (!%p412_p10)
}
 0x1c0   :  { %244 = dma.vmem_to_hbm [thread:$0]  %s242_s3, 128, %s485_s4, [#allocation4]  }
 0x1c1   :  { %430 = dma.done.wait [#allocation4], 128  }
 0x1c2   :  { %431 = vsyncadd [#allocation4], 4294967168 }
 0x1c3   :  { %248 = vsyncpa [#allocation3], 1 }
 0x1c4   :  { %249 = vsyncpa [#allocation6], 1 }
 0x1c5   :  { %250 = vsyncpa [#allocation9], 1 }
 0x1c6   :  { %251 = vsyncpa [#allocation4], 1 }

</bundles_post_ra>
